<compile_context>
chip_gen: v6e
topology: v6e:2x2x1
jax: 0.10.0
libtpu: 0.0.40
codegen_flags: <defaults>
</compile_context>

<pallas_src>
import jax
import jax.numpy as jnp
from jax.experimental import pallas as pl
from jax.experimental.pallas import tpu as pltpu

_LANES = 128
_MAX_TILE_ROWS = 8192                    # (8192, 128) f32 = 4 MiB / tensor / buffer
_VMEM_LIMIT_BYTES = 48 * 1024 * 1024     # streams (16 MiB dbl-buffered) + temporaries


def _round_down(x, m):
    return (x // m) * m


def _make_generator_loss_kernel(n_rows, tile_rows, tiles_per_core):
    """Per-core partial sums.

    Output row lanes: 0 = sum((true-sampled)^2) over this core's tiles,
                      1 = sum(-clamp(log(fake_preds), -100)),
                      2 = sum(0.5*(-0.5*logvar + exp(0.5*logvar) + mean^2)).
    """

    def kernel(true_ref, samp_ref, fake_ref, mu_ref, lv_ref, out_ref, acc_ref):
        c = pl.program_id(0)            # core ("parallel") axis
        i = pl.program_id(1)            # streaming reduction axis

        @pl.when(i == 0)
        def _init():
            acc_ref[...] = jnp.zeros_like(acc_ref)

        # ---- masked MSE partial sum for this (tile_rows, 128) tile ---------
        # Rows >= n_rows are ragged-tail / phantom-tile reads whose contents
        # are unspecified -> mask the diff BEFORE squaring (NaN-safe).
        g = c * tiles_per_core + i                        # global tile index
        row0 = g * tile_rows
        row_ids = row0 + jax.lax.broadcasted_iota(jnp.int32, (tile_rows, 1), 0)
        valid = row_ids < n_rows                          # (tile_rows, 1)

        d = true_ref[...].astype(jnp.float32) - samp_ref[...].astype(jnp.float32)
        d = jnp.where(valid, d, 0.0)

        # Pure-VALU accumulation into an (8, 128) accumulator; defer the
        # sublane + lane reduction to the finalize step.
        acc_ref[...] += jnp.sum(
            jnp.reshape(d * d, (tile_rows // 8, 8, _LANES)), axis=0)

        @pl.when(i == tiles_per_core - 1)
        def _finalize():
            rec_sum = jnp.sum(acc_ref[...])

            # BCE(fake_preds, ones) = mean(-log p); PyTorch clamps log at -100.
            p = fake_ref[...].astype(jnp.float32)
            bce_sum = -jnp.sum(jnp.maximum(jnp.log(p), -100.0))

            # Module's (nonstandard) KLD term.
            mu = mu_ref[...].astype(jnp.float32)
            lv = lv_ref[...].astype(jnp.float32)
            kld_sum = jnp.sum(0.5 * (-0.5 * lv + jnp.exp(0.5 * lv) + mu * mu))

            lane = jax.lax.broadcasted_iota(jnp.int32, out_ref.shape, 2)
            out_ref[...] = jnp.where(
                lane == 0, rec_sum,
                jnp.where(lane == 1, bce_sum,
                          jnp.where(lane == 2, kld_sum, 0.0)))

    return kernel


def generator_loss_pallas(true_data, fake_preds, sampled_data, z_mean, z_logvar,
                          beta=1.0, gamma=0.01, max_tile_rows=_MAX_TILE_ROWS):
    """Pallas implementation of GeneratorLoss.forward.

    Returns (total, log_p_y, rec, kld) as float32 scalars.
    """
    assert true_data.shape == sampled_data.shape

    n_img = true_data.size
    n_fake = fake_preds.size
    n_z = z_mean.size

    itemsize = jnp.dtype(true_data.dtype).itemsize
    # Sub-32-bit dtypes pack along sublanes: keep tile_rows a multiple of the
    # packing factor (8 f32, 16 bf16, 32 int8/fp8) to avoid relayouts.
    sublane_pack = max(8, 32 // max(itemsize, 1))

    # Lane-dense (n_rows, 128) view with no tile-multiple padding.
    n_rows = max(pl.cdiv(n_img, _LANES), sublane_pack)
    pad = n_rows * _LANES - n_img

    def _flat(x):
        x = jnp.reshape(x, (-1,))
        if pad:
            x = jnp.pad(x, (0, pad))      # zeros: diff == 0 -> no contribution
        return jnp.reshape(x, (n_rows, _LANES))

    true_2d = _flat(true_data)            # storage dtype preserved (cast in-kernel)
    samp_2d = _flat(sampled_data)
    # Small tensors: rank-2, lane-friendly, resident for the whole grid.
    fake_2d = jnp.reshape(fake_preds, (1, n_fake))
    mu_2d = jnp.reshape(z_mean, (1, n_z))
    lv_2d = jnp.reshape(z_logvar, (1, n_z))

    max_tile_rows = max(sublane_pack,
                        _round_down(int(max_tile_rows), sublane_pack))
    tile_rows = min(max_tile_rows, _round_down(n_rows, sublane_pack))
    n_tiles = pl.cdiv(n_rows, tile_rows)

    # Split the streaming reduction over 2 cores: up to ~2x on multi-TC chips
    # (v7x); a size-2 "parallel" axis is harmless on single-TC v5e/v6e.
    num_cores = 2 if n_tiles >= 2 else 1
    tiles_per_core = pl.cdiv(n_tiles, num_cores)

    kernel = _make_generator_loss_kernel(n_rows, tile_rows, tiles_per_core)

    def img_index_map(c, i):
        # Clamp phantom tiles (odd n_tiles split across 2 cores) onto the last
        # real tile; their contribution is zeroed by the in-kernel row mask.
        return (jnp.minimum(c * tiles_per_core + i, n_tiles - 1), 0)

    img_spec = pl.BlockSpec((tile_rows, _LANES), img_index_map)
    # TODO(synk): try pipeline_mode=pl.Buffered(3) on img_spec for v7x.
    fake_spec = pl.BlockSpec(fake_2d.shape, lambda c, i: (0, 0))
    z_spec = pl.BlockSpec(mu_2d.shape, lambda c, i: (0, 0))
    out_spec = pl.BlockSpec((1, 8, _LANES), lambda c, i: (c, 0, 0))

    cost = pl.CostEstimate(
        flops=int(5 * n_img + 8 * n_z + 3 * n_fake),
        transcendentals=int(n_z + n_fake),
        bytes_accessed=int(2 * n_img * itemsize
                           + n_fake * jnp.dtype(fake_preds.dtype).itemsize
                           + 2 * n_z * jnp.dtype(z_mean.dtype).itemsize
                           + num_cores * 8 * _LANES * 4),
    )

    out = pl.pallas_call(
        kernel,
        out_shape=jax.ShapeDtypeStruct((num_cores, 8, _LANES), jnp.float32),
        grid_spec=pltpu.PrefetchScalarGridSpec(
            num_scalar_prefetch=0,
            grid=(num_cores, tiles_per_core),
            in_specs=[img_spec, img_spec, fake_spec, z_spec, z_spec],
            out_specs=out_spec,
            scratch_shapes=[pltpu.VMEM((8, _LANES), jnp.float32)],
        ),
        compiler_params=pltpu.CompilerParams(
            dimension_semantics=("parallel", "arbitrary"),
            vmem_limit_bytes=_VMEM_LIMIT_BYTES),
        cost_estimate=cost,
    )(true_2d, samp_2d, fake_2d, mu_2d, lv_2d)

    # Tiny scalar finalize (divide by ORIGINAL element counts + weighted combine).
    rec = jnp.sum(out[:, 0, 0]) * (1.0 / float(n_img))
    log_p_y = out[0, 0, 1] * (1.0 / float(n_fake))
    kld = out[0, 0, 2] * (1.0 / float(n_z))
    total = gamma * log_p_y + rec + beta * kld
    return total, log_p_y, rec, kld


def _reference(true_data, fake_preds, sampled_data, z_mean, z_logvar,
               beta=1.0, gamma=0.01):
    log_p_y = jnp.mean(-jnp.maximum(jnp.log(fake_preds.astype(jnp.float32)), -100.0))
    d = true_data.astype(jnp.float32) - sampled_data.astype(jnp.float32)
    rec = jnp.mean(d * d)
    zm = z_mean.astype(jnp.float32)
    zl = z_logvar.astype(jnp.float32)
    kld = jnp.mean(0.5 * (-0.5 * zl + jnp.exp(0.5 * zl) + zm * zm))
    return gamma * log_p_y + rec + beta * kld, log_p_y, rec, kld


def generator_loss(true_data, fake_preds, sampled_data, z_mean, z_logvar,
                   beta=1.0, gamma=0.01, min_pallas_elements=65536):
    """Dispatcher: tiny inputs go to fused XLA (kernel-launch overhead dominates
    there); large inputs go to the bandwidth-bound Pallas kernel."""
    if true_data.size < min_pallas_elements:
        return _reference(true_data, fake_preds, sampled_data, z_mean, z_logvar,
                          beta=beta, gamma=gamma)
    return generator_loss_pallas(true_data, fake_preds, sampled_data, z_mean,
                                 z_logvar, beta=beta, gamma=gamma)


if __name__ == "__main__":
    key = jax.random.PRNGKey(0)

    def _assert_close(got, want):
        for g, w in zip(got, want):
            g, w = float(g), float(w)
            assert abs(g - w) <= 1e-4 + 1e-4 * abs(w), (g, w)

    # ---- primary small-shape case (matches the module: NCHW images + latent) --
    k1, k2, k3, k4, k5 = jax.random.split(key, 5)
    B, C, H, W = 2, 4, 16, 16
    Z = 32
    true_data = jax.random.normal(k1, (B, C, H, W), dtype=jnp.float32)
    sampled_data = jax.random.normal(k2, (B, C, H, W), dtype=jnp.float32)
    fake_preds = jax.nn.sigmoid(jax.random.normal(k3, (B,), dtype=jnp.float32))
    z_mean = jax.random.normal(k4, (B, Z), dtype=jnp.float32)
    z_logvar = jax.random.normal(k5, (B, Z), dtype=jnp.float32)

    outs = jax.block_until_ready(
        generator_loss_pallas(true_data, fake_preds, sampled_data, z_mean, z_logvar))
    _assert_close(outs, _reference(true_data, fake_preds, sampled_data,
                                   z_mean, z_logvar))

    # ---- extra coverage of the new code paths --------------------------------
    def _check(img_shape, z_dim, max_tile_rows=_MAX_TILE_ROWS, seed=1):
        ks = jax.random.split(jax.random.fold_in(key, seed), 5)
        b = img_shape[0]
        td = jax.random.normal(ks[0], img_shape, dtype=jnp.float32)
        sd = jax.random.normal(ks[1], img_shape, dtype=jnp.float32)
        fp = jax.nn.sigmoid(jax.random.normal(ks[2], (b,), dtype=jnp.float32))
        zm = jax.random.normal(ks[3], (b, z_dim), dtype=jnp.float32)
        zl = jax.random.normal(ks[4], (b, z_dim), dtype=jnp.float32)
        got = jax.block_until_ready(
            generator_loss_pallas(td, fp, sd, zm, zl, max_tile_rows=max_tile_rows))
        _assert_close(got, _reference(td, fp, sd, zm, zl))

    # Multi-tile two-core grid with a ragged last tile (in-kernel masking +
    # phantom-tile clamp): 6400 elems -> 50 rows, tile_rows=32, 2 tiles, 2 cores.
    _check((2, 5, 16, 40), 8, max_tile_rows=32, seed=1)
    # Element count not a multiple of 128 (exercises the minimal pad path).
    _check((3, 1, 7, 11), 5, seed=2)

    # Dispatching wrapper also works (plain-JAX path at this size).
    _ = jax.block_until_ready(
        generator_loss(true_data, fake_preds, sampled_data, z_mean, z_logvar))

    print("KERNEL_OK")
</pallas_src>

<mosaic_0001>
module attributes {stable_mosaic.version = 11 : i64} {
  func.func @kernel(%arg0: i32, %arg1: i32, %arg2: memref<16x128xf32, #tpu.memory_space<vmem>>, %arg3: memref<16x128xf32, #tpu.memory_space<vmem>>, %arg4: memref<1x2xf32, #tpu.memory_space<vmem>>, %arg5: memref<1x64xf32, #tpu.memory_space<vmem>>, %arg6: memref<1x64xf32, #tpu.memory_space<vmem>>, %arg7: memref<1x8x128xf32, #tpu.memory_space<vmem>>, %arg8: memref<8x128xf32, #tpu.memory_space<vmem>>) attributes {dimension_semantics = [#tpu.dimension_semantics<parallel>, #tpu.dimension_semantics<arbitrary>], iteration_bounds = array<i64: 1, 1>, scalar_prefetch = 0 : i64, scratch_operands = 1 : i64, tpu.core_type = #tpu.core_type<tc>, window_params = [{transform_indices = @transform_0, window_bounds = array<i64: 16, 128>}, {transform_indices = @transform_1, window_bounds = array<i64: 16, 128>}, {pipeline_mode = #tpu.pipeline_mode<synchronous>, transform_indices = @transform_2, window_bounds = array<i64: 1, 2>}, {pipeline_mode = #tpu.pipeline_mode<synchronous>, transform_indices = @transform_3, window_bounds = array<i64: 1, 64>}, {pipeline_mode = #tpu.pipeline_mode<synchronous>, transform_indices = @transform_4, window_bounds = array<i64: 1, 64>}, {transform_indices = @transform_5, window_bounds = array<i64: 1, 8, 128>}]} {
    %c0_i32 = arith.constant 0 : i32
    %0 = arith.cmpi eq, %arg1, %c0_i32 : i32
    %1 = arith.extui %0 : i1 to i32
    %c0_i32_0 = arith.constant 0 : i32
    %2 = arith.cmpi ne, %1, %c0_i32_0 : i32
    scf.if %2 {
      %cst_12 = arith.constant 0.000000e+00 : f32
      %27 = vector.broadcast %cst_12 : f32 to vector<8x128xf32>
      %c0_13 = arith.constant 0 : index
      %c0_14 = arith.constant 0 : index
      %28 = vector.load %arg8[%c0_13, %c0_14] : memref<8x128xf32, #tpu.memory_space<vmem>>, vector<8x128xf32>
      tpu.vector_store %arg8[%c0_13, %c0_14], %27 {strides = array<i32>} : memref<8x128xf32, #tpu.memory_space<vmem>>, vector<8x128xf32>,
    } else {
    }
    %c1_i32 = arith.constant 1 : i32
    %3 = arith.muli %arg0, %c1_i32 : i32
    %4 = arith.addi %3, %arg1 : i32
    %c16_i32 = arith.constant 16 : i32
    %5 = arith.muli %4, %c16_i32 : i32
    %6 = tpu.iota {dimensions = array<i32: 0>} : vector<16x1xi32>
    %7 = vector.broadcast %5 : i32 to vector<16x1xi32>
    %8 = arith.addi %7, %6 : vector<16x1xi32>
    %c16_i32_1 = arith.constant 16 : i32
    %9 = vector.broadcast %c16_i32_1 : i32 to vector<16x1xi32>
    %10 = arith.cmpi slt, %8, %9 : vector<16x1xi32>
    %c0 = arith.constant 0 : index
    %c0_2 = arith.constant 0 : index
    %11 = vector.load %arg2[%c0, %c0_2] : memref<16x128xf32, #tpu.memory_space<vmem>>, vector<16x128xf32>
    %c0_3 = arith.constant 0 : index
    %c0_4 = arith.constant 0 : index
    %12 = vector.load %arg3[%c0_3, %c0_4] : memref<16x128xf32, #tpu.memory_space<vmem>>, vector<16x128xf32>
    %13 = arith.subf %11, %12 : vector<16x128xf32>
    %cst = arith.constant 0.000000e+00 : f32
    %14 = vector.shape_cast %10 : vector<16x1xi1> to vector<16x1xi1>
    %15 = vector.broadcast %14 : vector<16x1xi1> to vector<16x128xi1>
    %16 = vector.broadcast %cst : f32 to vector<16x128xf32>
    %17 = arith.select %15, %13, %16 : vector<16x128xi1>, vector<16x128xf32>
    %c0_5 = arith.constant 0 : index
    %c0_6 = arith.constant 0 : index
    %18 = vector.load %arg8[%c0_5, %c0_6] : memref<8x128xf32, #tpu.memory_space<vmem>>, vector<8x128xf32>
    %19 = arith.mulf %17, %17 : vector<16x128xf32>
    %20 = vector.shape_cast %19 : vector<16x128xf32> to vector<2x8x128xf32>
    %cst_7 = arith.constant dense<0.000000e+00> : vector<8x128xf32>
    %21 = vector.multi_reduction <add>, %20, %cst_7 [0] : vector<2x8x128xf32> to vector<8x128xf32>
    %22 = arith.addf %18, %21 : vector<8x128xf32>
    %c0_8 = arith.constant 0 : index
    %c0_9 = arith.constant 0 : index
    %23 = vector.load %arg8[%c0_8, %c0_9] : memref<8x128xf32, #tpu.memory_space<vmem>>, vector<8x128xf32>
    tpu.vector_store %arg8[%c0_8, %c0_9], %22 {strides = array<i32>} : memref<8x128xf32, #tpu.memory_space<vmem>>, vector<8x128xf32>,
    %c0_i32_10 = arith.constant 0 : i32
    %24 = arith.cmpi eq, %arg1, %c0_i32_10 : i32
    %25 = arith.extui %24 : i1 to i32
    %c0_i32_11 = arith.constant 0 : i32
    %26 = arith.cmpi ne, %25, %c0_i32_11 : i32
    scf.if %26 {
      %c0_12 = arith.constant 0 : index
      %c0_13 = arith.constant 0 : index
      %27 = vector.load %arg8[%c0_12, %c0_13] : memref<8x128xf32, #tpu.memory_space<vmem>>, vector<8x128xf32>
      %28 = vector.shape_cast %27 : vector<8x128xf32> to vector<1x8x128xf32>
      %cst_14 = arith.constant dense<0.000000e+00> : vector<1xf32>
      %29 = vector.multi_reduction <add>, %28, %cst_14 [1, 2] : vector<1x8x128xf32> to vector<1xf32>
      %30 = vector.shape_cast %29 : vector<1xf32> to vector<1x1x1xf32>
      %31 = vector.extract %30[0, 0, 0] : f32 from vector<1x1x1xf32>
      %c0_15 = arith.constant 0 : index
      %c0_16 = arith.constant 0 : index
      %32 = vector.load %arg4[%c0_15, %c0_16] : memref<1x2xf32, #tpu.memory_space<vmem>>, vector<1x2xf32>
      %33 = math.log %32 : vector<1x2xf32>
      %cst_17 = arith.constant -1.000000e+02 : f32
      %34 = vector.broadcast %cst_17 : f32 to vector<1x2xf32>
      %35 = arith.maximumf %33, %34 : vector<1x2xf32>
      %36 = vector.shape_cast %35 : vector<1x2xf32> to vector<1x1x2xf32>
      %cst_18 = arith.constant dense<0.000000e+00> : vector<1xf32>
      %37 = vector.multi_reduction <add>, %36, %cst_18 [1, 2] : vector<1x1x2xf32> to vector<1xf32>
      %38 = vector.shape_cast %37 : vector<1xf32> to vector<1x1x1xf32>
      %39 = vector.extract %38[0, 0, 0] : f32 from vector<1x1x1xf32>
      %cst_19 = arith.constant 0.000000e+00 : f32
      %40 = arith.subf %cst_19, %39 : f32
      %c0_20 = arith.constant 0 : index
      %c0_21 = arith.constant 0 : index
      %41 = vector.load %arg5[%c0_20, %c0_21] : memref<1x64xf32, #tpu.memory_space<vmem>>, vector<1x64xf32>
      %c0_22 = arith.constant 0 : index
      %c0_23 = arith.constant 0 : index
      %42 = vector.load %arg6[%c0_22, %c0_23] : memref<1x64xf32, #tpu.memory_space<vmem>>, vector<1x64xf32>
      %cst_24 = arith.constant -5.000000e-01 : f32
      %43 = vector.broadcast %cst_24 : f32 to vector<1x64xf32>
      %44 = arith.mulf %43, %42 : vector<1x64xf32>
      %cst_25 = arith.constant 5.000000e-01 : f32
      %45 = vector.broadcast %cst_25 : f32 to vector<1x64xf32>
      %46 = arith.mulf %45, %42 : vector<1x64xf32>
      %47 = math.exp %46 : vector<1x64xf32>
      %48 = arith.addf %44, %47 : vector<1x64xf32>
      %49 = arith.mulf %41, %41 : vector<1x64xf32>
      %50 = arith.addf %48, %49 : vector<1x64xf32>
      %cst_26 = arith.constant 5.000000e-01 : f32
      %51 = vector.broadcast %cst_26 : f32 to vector<1x64xf32>
      %52 = arith.mulf %51, %50 : vector<1x64xf32>
      %53 = vector.shape_cast %52 : vector<1x64xf32> to vector<1x1x64xf32>
      %cst_27 = arith.constant dense<0.000000e+00> : vector<1xf32>
      %54 = vector.multi_reduction <add>, %53, %cst_27 [1, 2] : vector<1x1x64xf32> to vector<1xf32>
      %55 = vector.shape_cast %54 : vector<1xf32> to vector<1x1x1xf32>
      %56 = vector.extract %55[0, 0, 0] : f32 from vector<1x1x1xf32>
      %57 = tpu.iota {dimensions = array<i32: 2>} : vector<1x8x128xi32>
      %c0_i32_28 = arith.constant 0 : i32
      %58 = vector.broadcast %c0_i32_28 : i32 to vector<1x8x128xi32>
      %59 = arith.cmpi eq, %57, %58 : vector<1x8x128xi32>
      %c1_i32_29 = arith.constant 1 : i32
      %60 = vector.broadcast %c1_i32_29 : i32 to vector<1x8x128xi32>
      %61 = arith.cmpi eq, %57, %60 : vector<1x8x128xi32>
      %c2_i32 = arith.constant 2 : i32
      %62 = vector.broadcast %c2_i32 : i32 to vector<1x8x128xi32>
      %63 = arith.cmpi eq, %57, %62 : vector<1x8x128xi32>
      %cst_30 = arith.constant 0.000000e+00 : f32
      %64 = vector.broadcast %56 : f32 to vector<1x8x128xf32>
      %65 = vector.broadcast %cst_30 : f32 to vector<1x8x128xf32>
      %66 = arith.select %63, %64, %65 : vector<1x8x128xi1>, vector<1x8x128xf32>
      %67 = vector.broadcast %40 : f32 to vector<1x8x128xf32>
      %68 = arith.select %61, %67, %66 : vector<1x8x128xi1>, vector<1x8x128xf32>
      %69 = vector.broadcast %31 : f32 to vector<1x8x128xf32>
      %70 = arith.select %59, %69, %68 : vector<1x8x128xi1>, vector<1x8x128xf32>
      %c0_31 = arith.constant 0 : index
      %c0_32 = arith.constant 0 : index
      %c0_33 = arith.constant 0 : index
      %71 = vector.load %arg7[%c0_31, %c0_32, %c0_33] : memref<1x8x128xf32, #tpu.memory_space<vmem>>, vector<1x8x128xf32>
      tpu.vector_store %arg7[%c0_31, %c0_32, %c0_33], %70 {strides = array<i32>} : memref<1x8x128xf32, #tpu.memory_space<vmem>>, vector<1x8x128xf32>,
    } else {
    }
    return
  }
  func.func @transform_0(%arg0: i32, %arg1: i32) -> (i32, i32) {
    %c1_i32 = arith.constant 1 : i32
    %0 = arith.muli %arg0, %c1_i32 : i32
    %1 = arith.addi %0, %arg1 : i32
    %c0_i32 = arith.constant 0 : i32
    %2 = arith.minsi %1, %c0_i32 : i32
    %c0_i32_0 = arith.constant 0 : i32
    %c0_i32_1 = arith.constant 0 : i32
    return %2, %c0_i32_0 : i32, i32
  }
  func.func @transform_1(%arg0: i32, %arg1: i32) -> (i32, i32) {
    %c1_i32 = arith.constant 1 : i32
    %0 = arith.muli %arg0, %c1_i32 : i32
    %1 = arith.addi %0, %arg1 : i32
    %c0_i32 = arith.constant 0 : i32
    %2 = arith.minsi %1, %c0_i32 : i32
    %c0_i32_0 = arith.constant 0 : i32
    %c0_i32_1 = arith.constant 0 : i32
    return %2, %c0_i32_0 : i32, i32
  }
  func.func @transform_2(%arg0: i32, %arg1: i32) -> (i32, i32) {
    %c0_i32 = arith.constant 0 : i32
    %c0_i32_0 = arith.constant 0 : i32
    %c0_i32_1 = arith.constant 0 : i32
    return %c0_i32, %c0_i32_0 : i32, i32
  }
  func.func @transform_3(%arg0: i32, %arg1: i32) -> (i32, i32) {
    %c0_i32 = arith.constant 0 : i32
    %c0_i32_0 = arith.constant 0 : i32
    %c0_i32_1 = arith.constant 0 : i32
    return %c0_i32, %c0_i32_0 : i32, i32
  }
  func.func @transform_4(%arg0: i32, %arg1: i32) -> (i32, i32) {
    %c0_i32 = arith.constant 0 : i32
    %c0_i32_0 = arith.constant 0 : i32
    %c0_i32_1 = arith.constant 0 : i32
    return %c0_i32, %c0_i32_0 : i32, i32
  }
  func.func @transform_5(%arg0: i32, %arg1: i32) -> (i32, i32, i32) {
    %c0_i32 = arith.constant 0 : i32
    %c0_i32_0 = arith.constant 0 : i32
    %c0_i32_1 = arith.constant 0 : i32
    return %arg0, %c0_i32, %c0_i32_0 : i32, i32, i32
  }
}

</mosaic_0001>

<bundles_post_ra>
// kernel: tpu_custom_call.1
= control target key start
LH: loop header
LB: loop body
LE: loop exit
PB: predicated region body
PF: predicated region fallthrough
CT: control target
= control target key end

     0   :  { %10 = vsyncpa [#allocation4], 0  ;;  %s318_s0 = inlined_call_operand.hbm [shape: f32[16,128], index: 0, kind: input, shape index: {}]   ;;  %s319_s1 = inlined_call_operand.hbm [shape: f32[16,128], index: 1, kind: input, shape index: {}]   ;;  %s320_s2 = inlined_call_operand.vmem [shape: f32[1,2], index: 2, kind: input, shape index: {}]   ;;  %s321_s3 = inlined_call_operand.vmem [shape: f32[1,64], index: 3, kind: input, shape index: {}]   ;;  %s322_s4 = inlined_call_operand.vmem [shape: f32[1,64], index: 4, kind: input, shape index: {}]   ;;  %s323_s5 = inlined_call_operand.hbm [shape: f32[1,8,128], index: 5, kind: output, shape index: {}]  }
   0x1   :  { %11 = vsyncpa [#allocation7], 0 }
   0x2   :  { %12 = vsyncpa [#allocation5], 0  ;;  %s265_s18 = smov [#allocation3]  }
   0x3   :  { %s24_s19 = sshll.u32 %s265_s18, 4  ;;  %s25_s19 = int_to_ptr.vmem [resolvable:$true] %s24_s19 }
   0x4   :  { %s207_s20 = scalar_lea.vmem %s25_s19, 256  ;;  %p212_p1 = scmp.lt.s32.totalorder %s25_s19, %s25_s19 }
   0x5   :  { %p208_p0 = scmp.ne.s32.totalorder %s25_s19, %s207_s20  ;;  %p213_p2 = scmp.lt.s32.totalorder %s207_s20, %s207_s20 }
   0x7   :  { %p214_p3 = por %p213_p2, %p212_p1 }
   0x9   :  { %p215_p4 = pnand %p214_p3, %p208_p0 }
   0xb   :  { %218 = shalt.err (!%p215_p4)
}
   0xc   :  { %s266_s21 = smov 128   ;;  %s267_s22 = smov 8  }
   0xd   :  { %30 = dma.hbm_to_vmem [thread:$0]  %s318_s0, 256, %s25_s19, [#allocation4], %s266_s21, %s266_s21, %s267_s22  }
   0xe   :  { %s268_s25 = smov [#allocation6]  }
   0xf   :  { %s42_s26 = sshll.u32 %s268_s25, 4  ;;  %s43_s26 = int_to_ptr.vmem [resolvable:$true] %s42_s26 }
  0x10   :  { %s227_s27 = scalar_lea.vmem %s43_s26, 256  ;;  %p232_p6 = scmp.lt.s32.totalorder %s43_s26, %s43_s26 }
  0x11   :  { %p228_p5 = scmp.ne.s32.totalorder %s43_s26, %s227_s27  ;;  %p233_p7 = scmp.lt.s32.totalorder %s227_s27, %s227_s27 }
  0x13   :  { %p234_p8 = por %p233_p7, %p232_p6 }
  0x15   :  { %p235_p9 = pnand %p234_p8, %p228_p5 }
  0x17   :  { %238 = shalt.err (!%p235_p9)
}
  0x18   :  { %48 = dma.hbm_to_vmem [thread:$0]  %s319_s1, 256, %s43_s26, [#allocation7], %s266_s21, %s266_s21, %s267_s22  }
  0x19   :  { %259 = dma.done.wait [#allocation4], 256  }
  0x1a   :  { %260 = vsyncadd [#allocation4], 4294967040 }
  0x1b   :  { %261 = dma.done.wait [#allocation7], 256  }
  0x1c   :  { %262 = vsyncadd [#allocation7], 4294967040  ;;  %v84_v0 = vld [vmem:[#allocation3] sm:$0xff]  ;;  %v85_v1 = vld [vmem:[#allocation3 + $0x8] sm:$0xff]  ;;  %vm119_vm0 = vcmask 8192   ;;  %vm141_vm1 = vcmask 516096   ;;  %v152_v46 = vlaneseq }
  0x1d   :  { %v86_v2 = vld [vmem:[#allocation6] sm:$0xff]  ;;  %v87_v3 = vld [vmem:[#allocation6 + $0x8] sm:$0xff]  ;;  %v115_v5 = vld [vmem:[%s320_s2] sm:$0x1]  ;;  %s269_s10 = smov [#allocation8]  }
  0x1e   :  { %v88_v4 = vsub.f32 %v84_v0, %v86_v2  ;;  %v89_v6 = vsub.f32 %v85_v1, %v87_v3  ;;  %195 = vlog2.f32 %v115_v5  ;;  %v132_v7 = vld [vmem:[%s322_s4] sm:$0x1]  ;;  %v153_v47 = vand.u32 127, %v152_v46  ;;  %s170_s11 = sshll.u32 %s269_s10, 4  ;;  %s171_s11 = int_to_ptr.vmem [resolvable:$true] %s170_s11 }
  0x1f   :  { %v134_v9 = vmul.f32 0.5, %v132_v7  ;;  %v131_v15 = vld [vmem:[%s321_s3] sm:$0x1]  ;;  %v133_v16 = vmul.f32 -0.5, %v132_v7  ;;  %s239_s12 = scalar_lea.vmem %s171_s11, 128  ;;  %p244_p11 = scmp.lt.s32.totalorder %s171_s11, %s171_s11 }
  0x20   :  { %v97_v8 = vmul.f32 %v88_v4, %v88_v4  ;;  %v98_v10 = vmul.f32 %v89_v6, %v89_v6  ;;  %v138_v18 = vmul.f32 %v131_v15, %v131_v15  ;;  %vm156_vm2 = vcmp.eq.s32.totalorder %v153_v47, 2  ;;  %p240_p10 = scmp.ne.s32.totalorder %s171_s11, %s239_s12  ;;  %p245_p12 = scmp.lt.s32.totalorder %s239_s12, %s239_s12 }
  0x21   :  { %v135_v11 = vmul.f32 1.442695, %v134_v9  ;;  %vm155_vm3 = vcmp.eq.s32.totalorder %v153_v47, 1  ;;  %vm154_vm4 = vcmp.eq.s32.totalorder %v153_v47, 0 }
  0x22   :  { %v99_v12 = vadd.f32 %v98_v10, %v97_v8  ;;  %p246_p13 = por %p245_p12, %p244_p11 }
  0x23   :  { %197 = vpow2.f32 %v135_v11 }
  0x24   :  { %106 = vadd.xlane.f32.xlu0 %v99_v12  ;;  %p247_p0 = pnand %p246_p13, %p240_p10 }
  0x2b   :  { %v196_v13 = vpop.eup %195 }
  0x2c   :  { %v117_v14 = vmul.f32 0.6931472, %v196_v13 }
  0x2e   :  { %v118_v17 = vmax.f32 %v117_v14, -100.0 }
  0x30   :  { %v198_v19 = vpop.eup %197  ;;  %v120_v20 = vsel %vm119_vm0, %v118_v17, 0.0 }
  0x31   :  { %121 = vadd.xlane.f32.xlu0 %v120_v20  ;;  %v137_v21 = vadd.f32 %v198_v19, %v133_v16 }
  0x33   :  { %v139_v22 = vadd.f32 %v138_v18, %v137_v21 }
  0x35   :  { %v140_v23 = vmul.f32 0.5, %v139_v22 }
  0x37   :  { %v142_v24 = vsel %vm141_vm1, %v140_v23, 0.0 }
  0x38   :  { %143 = vadd.xlane.f32.xlu1 %v142_v24 }
  0xad   :  { %v107_v25 = vpop.xlane.xlu0 %106 }
  0xae   :  { %v108_v26 = vrot.slane %v107_v25, 4 }
  0xb0   :  { %v109_v27 = vadd.f32 %v108_v26, %v107_v25 }
  0xb2   :  { %v110_v28 = vrot.slane %v109_v27, 2 }
  0xb4   :  { %v111_v29 = vadd.f32 %v110_v28, %v109_v27 }
  0xb6   :  { %v112_v30 = vrot.slane %v111_v29, 1 }
  0xb8   :  { %v113_v31 = vadd.f32 %v112_v30, %v111_v29 }
  0xba   :  { %v122_v32 = vpop.xlane.xlu0 %121  ;;  %184 = vpush %v113_v31 }
  0xbb   :  { %v123_v33 = vrot.slane %v122_v32, 4 }
  0xbd   :  { %v124_v34 = vadd.f32 %v123_v33, %v122_v32 }
  0xbf   :  { %v125_v35 = vrot.slane %v124_v34, 2 }
  0xc1   :  { %v126_v36 = vadd.f32 %v125_v35, %v124_v34  ;;  %v144_v37 = vpop.xlane.xlu1 %143 }
  0xc2   :  { %v145_v38 = vrot.slane %v144_v37, 4 }
  0xc3   :  { %v127_v39 = vrot.slane %v126_v36, 1 }
  0xc4   :  { %v146_v40 = vadd.f32 %v145_v38, %v144_v37 }
  0xc5   :  { %v128_v41 = vadd.f32 %v127_v39, %v126_v36 }
  0xc6   :  { %v147_v42 = vrot.slane %v146_v40, 2 }
  0xc7   :  { %186 = vpush %v128_v41 }
  0xc8   :  { %v148_v43 = vadd.f32 %v147_v42, %v146_v40 }
  0xca   :  { %v149_v44 = vrot.slane %v148_v43, 1 }
  0xcc   :  { %v150_v45 = vadd.f32 %v149_v44, %v148_v43 }
  0xce   :  { %188 = vpush %v150_v45 }
  0xeb   :  { %s185_s2 = spop %184 }
  0xec   :  { %v161_v51 = vstv %s185_s2 }
  0xf8   :  { %s187_s3 = spop %186 }
  0xf9   :  { %s130_s4 = ssub.f32 0.0, %s187_s3 }
  0xfb   :  { %v159_v49 = vstv %s130_s4 }
  0xff   :  { %s189_s9 = spop %188 }
 0x100   :  { %v157_v48 = vstv %s189_s9 }
 0x101   :  { %v158_v50 = vsel %vm156_vm2, %v157_v48, 0.0 }
 0x102   :  { %v160_v52 = vsel %vm155_vm3, %v159_v49, %v158_v50 }
 0x103   :  { %v162_v53 = vsel %vm154_vm4, %v161_v51, %v160_v52 }
 0x104   :  { %163 = vst [vmem:[#allocation8] sm:$0xff] %v162_v53 }
 0x105   :  { %250 = shalt.err (!%p247_p0)
}
 0x106   :  { %173 = dma.vmem_to_hbm [thread:$0]  %s171_s11, 128, %s323_s5, [#allocation5]  }
 0x107   :  { %263 = dma.done.wait [#allocation5], 128  }
 0x108   :  { %264 = vsyncadd [#allocation5], 4294967168 }
 0x109   :  { %177 = vsyncpa [#allocation4], 1 }
 0x10a   :  { %178 = vsyncpa [#allocation7], 1 }
 0x10b   :  { %179 = vsyncpa [#allocation5], 1 }

</bundles_post_ra>
